<compile_context>
chip_gen: v5e
topology: v5e:2x2
jax: 0.10.0
libtpu: 0.0.40
codegen_flags: <defaults>
</compile_context>

<pallas_src>
import functools

import jax
import jax.numpy as jnp
from jax.experimental import pallas as pl
from jax.experimental.pallas import tpu as pltpu

_LANE = 128


def generate_model_kernel(x_ref, wc_ref, w1_ref, b1_ref, w2_ref, b2_ref, out_ref,
                          *, C, HW, conv_dtype):
    # x_ref:  (TB, C*HW)   2-D lane-dense image slab (pixels on lanes)
    # wc_ref: (F, C)       synthetic 1x1-conv weight, pre-scaled by 1/HW
    # w1_ref: (F, HID),  b1_ref: (1, HID)
    # w2_ref: (HID, NOP), b2_ref: (1, NOP)   (NOP = num_outs padded to 128 lanes)
    # out_ref: (TB, NOP)
    TB = x_ref.shape[0]
    F = wc_ref.shape[0]

    # Hoisted per-channel weight columns (reshape only; the lane splat happens in the FMA).
    wc = wc_ref[...].astype(conv_dtype)                      # (F, C)
    wcb = [wc[:, c:c + 1][None, :, :] for c in range(C)]     # each (1, F, 1)

    def conv_relu_chunk(base, width):
        # h[b, f, p] = sum_c wc[f, c] * x[b, c, p]   for p in [base, base + width)
        hc = None
        for c in range(C):                                   # C is tiny & static (3)
            lo = c * HW + base                               # static, lane-aligned offset
            xc = x_ref[:, lo:lo + width].astype(conv_dtype)  # (TB, width)
            t = xc[:, None, :] * wcb[c]                      # VPU FMA -> (TB, F, width)
            hc = t if hc is None else hc + t
        return jnp.maximum(hc, 0.0).astype(jnp.float32)      # ReLU; accumulate in f32

    # Accumulate ReLU'd 128-lane chunks with VPU adds; ONE XLU lane-reduce at the end.
    full = (HW // _LANE) * _LANE
    acc = None                                               # (TB, F, 128) f32, bounded
    for base in range(0, full, _LANE):
        hc = conv_relu_chunk(base, _LANE)
        acc = hc if acc is None else acc + hc
    feat = (jnp.sum(acc, axis=-1) if acc is not None
            else jnp.zeros((TB, F), jnp.float32))            # (TB, F); 1/HW folded into wc
    if full < HW:                                            # ragged tail (not hit for 16x16)
        feat = feat + jnp.sum(conv_relu_chunk(full, HW - full), axis=-1)

    # --- fc head: Linear -> ReLU -> Linear (MXU, M = TB) ---
    z = jnp.dot(feat, w1_ref[...], preferred_element_type=jnp.float32) + b1_ref[...]
    z = jnp.maximum(z, 0.0)                                  # (TB, HID)
    y = jnp.dot(z, w2_ref[...], preferred_element_type=jnp.float32) + b2_ref[...]
    out_ref[...] = y.astype(out_ref.dtype)                   # (TB, NOP) unmasked lane-dense vst


def prepare_params(wc_fc, w1, b1, w2, b2, hw):
    """One-time host-side prep (model init, NOT per forward call):
      * fold the 1/HW global-average-pool scale into the conv weight
        (ReLU is positive-homogeneous: relu(a*x) = a*relu(x) for a > 0),
      * zero-pad the tiny num_outs dim to a full 128-lane width so the kernel's
        output store is unmasked."""
    no = w2.shape[1]
    nop = ((no + _LANE - 1) // _LANE) * _LANE
    w2p = jnp.zeros((w2.shape[0], nop), w2.dtype).at[:, :no].set(w2)
    b2p = jnp.zeros((1, nop), b2.dtype).at[:, :no].set(b2)
    return (wc_fc / float(hw), w1, b1, w2p, b2p, no)


def _pick_batch_tile(B):
    # Small B: one fused grid step. Moderate B: split into >= 2 tiles (rounded to a
    # multiple of 8 sublanes) so both v7x TensorCores get work. Cap at 32 rows so the
    # bounded (TB, F, 128) conv accumulator stays ~2 MiB (safe on v5e/v6e/v7x VMEM).
    if B <= 8:
        return B
    half = -(-B // 2)
    return min(32, ((half + 7) // 8) * 8)


def generate_model_forward(x_nchw, params, *, conv_dtype=jnp.float32):
    """x_nchw: (B, C, H, W) f32; params from prepare_params()  ->  (B, num_outs) f32.

    conv_dtype=jnp.bfloat16 is a valid speed knob on v6e/v7x (2 elems/lane on the
    VPU); keep f32 on v5e and when tight tolerances are required."""
    wc_s, w1, b1, w2p, b2p, no = params
    B, C, H, W = x_nchw.shape
    HW = H * W
    F, HID = w1.shape
    NOP = w2p.shape[1]

    # Lane-dense 2-D image layout: pure reshape of NCHW (no transpose, no extra HBM pass).
    x2d = x_nchw.reshape(B, C * HW)

    TB = _pick_batch_tile(B)
    grid = (pl.cdiv(B, TB),)

    kernel = functools.partial(generate_model_kernel, C=C, HW=HW, conv_dtype=conv_dtype)

    out = pl.pallas_call(
        kernel,
        out_shape=jax.ShapeDtypeStruct((B, NOP), jnp.float32),
        grid_spec=pltpu.PrefetchScalarGridSpec(
            num_scalar_prefetch=0,
            grid=grid,
            in_specs=[
                pl.BlockSpec((TB, C * HW), lambda i: (i, 0)),   # image tile (pipelined)
                pl.BlockSpec((F, C), lambda i: (0, 0)),         # conv weight (resident)
                pl.BlockSpec((F, HID), lambda i: (0, 0)),       # fc1 weight (resident)
                pl.BlockSpec((1, HID), lambda i: (0, 0)),       # fc1 bias
                pl.BlockSpec((HID, NOP), lambda i: (0, 0)),     # fc2 weight (padded, resident)
                pl.BlockSpec((1, NOP), lambda i: (0, 0)),       # fc2 bias (padded)
            ],
            out_specs=pl.BlockSpec((TB, NOP), lambda i: (i, 0)),
        ),
        compiler_params=pltpu.CompilerParams(
            dimension_semantics=("parallel",),      # independent batch tiles (v7x megacore)
            vmem_limit_bytes=32 * 1024 * 1024,      # explicit, generous headroom on all gens
        ),
    )(x2d, wc_s, w1, b1, w2p, b2p)

    return out[:, :no]


def _reference(x_nchw, wc_fc, w1, b1, w2, b2):
    B, C, H, W = x_nchw.shape
    x = x_nchw.reshape(B, C, H * W)
    h = jnp.maximum(jnp.einsum("fc,bcp->bfp", wc_fc, x), 0.0)
    feat = jnp.mean(h, axis=-1)
    z = jnp.maximum(feat @ w1 + b1, 0.0)
    return z @ w2 + b2


if __name__ == "__main__":
    # small shapes: batch=2, channels=3 (RGB), spatial=16x16,
    # synthetic base feature dim F=128, hidden=128 (module default), num_outs=5
    B, C, H, W = 2, 3, 16, 16
    F, HID, NO = 128, 128, 5

    key = jax.random.PRNGKey(0)
    kx, kc, k1, kb1, k2, kb2 = jax.random.split(key, 6)

    x = jax.random.normal(kx, (B, C, H, W), dtype=jnp.float32)
    wc = jax.random.normal(kc, (F, C), dtype=jnp.float32) * 0.1
    w1 = jax.random.normal(k1, (F, HID), dtype=jnp.float32) * 0.1
    b1 = jax.random.normal(kb1, (1, HID), dtype=jnp.float32) * 0.01
    w2 = jax.random.normal(k2, (HID, NO), dtype=jnp.float32) * 0.1
    b2 = jax.random.normal(kb2, (1, NO), dtype=jnp.float32) * 0.01

    params = prepare_params(wc, w1, b1, w2, b2, H * W)   # one-time init-side prep
    out = generate_model_forward(x, params)
    out = jax.block_until_ready(out)

    ref = _reference(x, wc, w1, b1, w2, b2)
    assert out.shape == (B, NO)
    assert jnp.allclose(out, ref, atol=1e-4, rtol=1e-4), "mismatch vs reference"

    print("KERNEL_OK")
</pallas_src>

<mosaic_0001>
module attributes {stable_mosaic.version = 11 : i64} {
  func.func @generate_model_kernel(%arg0: i32, %arg1: memref<2x768xf32, #tpu.memory_space<vmem>>, %arg2: memref<128x3xf32, #tpu.memory_space<vmem>>, %arg3: memref<128x128xf32, #tpu.memory_space<vmem>>, %arg4: memref<1x128xf32, #tpu.memory_space<vmem>>, %arg5: memref<128x128xf32, #tpu.memory_space<vmem>>, %arg6: memref<1x128xf32, #tpu.memory_space<vmem>>, %arg7: memref<2x128xf32, #tpu.memory_space<vmem>>) attributes {dimension_semantics = [#tpu.dimension_semantics<parallel>], iteration_bounds = array<i64: 1>, scalar_prefetch = 0 : i64, scratch_operands = 0 : i64, tpu.core_type = #tpu.core_type<tc>, window_params = [{transform_indices = @transform_0, window_bounds = array<i64: 2, 768>}, {pipeline_mode = #tpu.pipeline_mode<synchronous>, transform_indices = @transform_1, window_bounds = array<i64: 128, 3>}, {pipeline_mode = #tpu.pipeline_mode<synchronous>, transform_indices = @transform_2, window_bounds = array<i64: 128, 128>}, {pipeline_mode = #tpu.pipeline_mode<synchronous>, transform_indices = @transform_3, window_bounds = array<i64: 1, 128>}, {pipeline_mode = #tpu.pipeline_mode<synchronous>, transform_indices = @transform_4, window_bounds = array<i64: 128, 128>}, {pipeline_mode = #tpu.pipeline_mode<synchronous>, transform_indices = @transform_5, window_bounds = array<i64: 1, 128>}, {transform_indices = @transform_6, window_bounds = array<i64: 2, 128>}]} {
    %c0 = arith.constant 0 : index
    %c0_0 = arith.constant 0 : index
    %0 = vector.load %arg2[%c0, %c0_0] : memref<128x3xf32, #tpu.memory_space<vmem>>, vector<128x3xf32>
    %1 = vector.extract_strided_slice %0 {offsets = [0, 0], sizes = [128, 1], strides = [1, 1]} : vector<128x3xf32> to vector<128x1xf32>
    %2 = vector.shape_cast %1 : vector<128x1xf32> to vector<1x128x1xf32>
    %3 = vector.extract_strided_slice %0 {offsets = [0, 1], sizes = [128, 1], strides = [1, 1]} : vector<128x3xf32> to vector<128x1xf32>
    %4 = vector.shape_cast %3 : vector<128x1xf32> to vector<1x128x1xf32>
    %5 = vector.extract_strided_slice %0 {offsets = [0, 2], sizes = [128, 1], strides = [1, 1]} : vector<128x3xf32> to vector<128x1xf32>
    %6 = vector.shape_cast %5 : vector<128x1xf32> to vector<1x128x1xf32>
    %c0_1 = arith.constant 0 : index
    %c0_2 = arith.constant 0 : index
    %7 = vector.load %arg1[%c0_1, %c0_2] : memref<2x768xf32, #tpu.memory_space<vmem>>, vector<2x128xf32>
    %8 = vector.shape_cast %7 : vector<2x128xf32> to vector<2x1x128xf32>
    %9 = vector.broadcast %8 : vector<2x1x128xf32> to vector<2x128x128xf32>
    %10 = vector.broadcast %2 : vector<1x128x1xf32> to vector<2x128x128xf32>
    %11 = arith.mulf %9, %10 : vector<2x128x128xf32>
    %c0_3 = arith.constant 0 : index
    %c256 = arith.constant 256 : index
    %12 = vector.load %arg1[%c0_3, %c256] : memref<2x768xf32, #tpu.memory_space<vmem>>, vector<2x128xf32>
    %13 = vector.shape_cast %12 : vector<2x128xf32> to vector<2x1x128xf32>
    %14 = vector.broadcast %13 : vector<2x1x128xf32> to vector<2x128x128xf32>
    %15 = vector.broadcast %4 : vector<1x128x1xf32> to vector<2x128x128xf32>
    %16 = arith.mulf %14, %15 : vector<2x128x128xf32>
    %17 = arith.addf %11, %16 : vector<2x128x128xf32>
    %c0_4 = arith.constant 0 : index
    %c512 = arith.constant 512 : index
    %18 = vector.load %arg1[%c0_4, %c512] : memref<2x768xf32, #tpu.memory_space<vmem>>, vector<2x128xf32>
    %19 = vector.shape_cast %18 : vector<2x128xf32> to vector<2x1x128xf32>
    %20 = vector.broadcast %19 : vector<2x1x128xf32> to vector<2x128x128xf32>
    %21 = vector.broadcast %6 : vector<1x128x1xf32> to vector<2x128x128xf32>
    %22 = arith.mulf %20, %21 : vector<2x128x128xf32>
    %23 = arith.addf %17, %22 : vector<2x128x128xf32>
    %cst = arith.constant 0.000000e+00 : f32
    %24 = vector.broadcast %cst : f32 to vector<2x128x128xf32>
    %25 = arith.maximumf %23, %24 : vector<2x128x128xf32>
    %c0_5 = arith.constant 0 : index
    %c128 = arith.constant 128 : index
    %26 = vector.load %arg1[%c0_5, %c128] : memref<2x768xf32, #tpu.memory_space<vmem>>, vector<2x128xf32>
    %27 = vector.shape_cast %26 : vector<2x128xf32> to vector<2x1x128xf32>
    %28 = vector.broadcast %27 : vector<2x1x128xf32> to vector<2x128x128xf32>
    %29 = vector.broadcast %2 : vector<1x128x1xf32> to vector<2x128x128xf32>
    %30 = arith.mulf %28, %29 : vector<2x128x128xf32>
    %c0_6 = arith.constant 0 : index
    %c384 = arith.constant 384 : index
    %31 = vector.load %arg1[%c0_6, %c384] : memref<2x768xf32, #tpu.memory_space<vmem>>, vector<2x128xf32>
    %32 = vector.shape_cast %31 : vector<2x128xf32> to vector<2x1x128xf32>
    %33 = vector.broadcast %32 : vector<2x1x128xf32> to vector<2x128x128xf32>
    %34 = vector.broadcast %4 : vector<1x128x1xf32> to vector<2x128x128xf32>
    %35 = arith.mulf %33, %34 : vector<2x128x128xf32>
    %36 = arith.addf %30, %35 : vector<2x128x128xf32>
    %c0_7 = arith.constant 0 : index
    %c640 = arith.constant 640 : index
    %37 = vector.load %arg1[%c0_7, %c640] : memref<2x768xf32, #tpu.memory_space<vmem>>, vector<2x128xf32>
    %38 = vector.shape_cast %37 : vector<2x128xf32> to vector<2x1x128xf32>
    %39 = vector.broadcast %38 : vector<2x1x128xf32> to vector<2x128x128xf32>
    %40 = vector.broadcast %6 : vector<1x128x1xf32> to vector<2x128x128xf32>
    %41 = arith.mulf %39, %40 : vector<2x128x128xf32>
    %42 = arith.addf %36, %41 : vector<2x128x128xf32>
    %cst_8 = arith.constant 0.000000e+00 : f32
    %43 = vector.broadcast %cst_8 : f32 to vector<2x128x128xf32>
    %44 = arith.maximumf %42, %43 : vector<2x128x128xf32>
    %45 = arith.addf %25, %44 : vector<2x128x128xf32>
    %cst_9 = arith.constant dense<0.000000e+00> : vector<2x128xf32>
    %46 = vector.multi_reduction <add>, %45, %cst_9 [2] : vector<2x128x128xf32> to vector<2x128xf32>
    %c0_10 = arith.constant 0 : index
    %c0_11 = arith.constant 0 : index
    %47 = vector.load %arg3[%c0_10, %c0_11] : memref<128x128xf32, #tpu.memory_space<vmem>>, vector<128x128xf32>
    %cst_12 = arith.constant dense<0.000000e+00> : vector<2x128xf32>
    %48 = tpu.matmul %46, %47, %cst_12 {dimension_numbers = #tpu.dot_dimension_numbers<[1], [0], [0], [1], [0, 0, 1, 1], [], []>} : vector<2x128xf32>, vector<128x128xf32>, vector<2x128xf32> -> vector<2x128xf32>
    %c0_13 = arith.constant 0 : index
    %c0_14 = arith.constant 0 : index
    %49 = vector.load %arg4[%c0_13, %c0_14] : memref<1x128xf32, #tpu.memory_space<vmem>>, vector<1x128xf32>
    %50 = vector.broadcast %49 : vector<1x128xf32> to vector<2x128xf32>
    %51 = arith.addf %48, %50 : vector<2x128xf32>
    %cst_15 = arith.constant 0.000000e+00 : f32
    %52 = vector.broadcast %cst_15 : f32 to vector<2x128xf32>
    %53 = arith.maximumf %51, %52 : vector<2x128xf32>
    %c0_16 = arith.constant 0 : index
    %c0_17 = arith.constant 0 : index
    %54 = vector.load %arg5[%c0_16, %c0_17] : memref<128x128xf32, #tpu.memory_space<vmem>>, vector<128x128xf32>
    %cst_18 = arith.constant dense<0.000000e+00> : vector<2x128xf32>
    %55 = tpu.matmul %53, %54, %cst_18 {dimension_numbers = #tpu.dot_dimension_numbers<[1], [0], [0], [1], [0, 0, 1, 1], [], []>} : vector<2x128xf32>, vector<128x128xf32>, vector<2x128xf32> -> vector<2x128xf32>
    %c0_19 = arith.constant 0 : index
    %c0_20 = arith.constant 0 : index
    %56 = vector.load %arg6[%c0_19, %c0_20] : memref<1x128xf32, #tpu.memory_space<vmem>>, vector<1x128xf32>
    %57 = vector.broadcast %56 : vector<1x128xf32> to vector<2x128xf32>
    %58 = arith.addf %55, %57 : vector<2x128xf32>
    %c0_21 = arith.constant 0 : index
    %c0_22 = arith.constant 0 : index
    %59 = vector.load %arg7[%c0_21, %c0_22] : memref<2x128xf32, #tpu.memory_space<vmem>>, vector<2x128xf32>
    tpu.vector_store %arg7[%c0_21, %c0_22], %58 {strides = array<i32>} : memref<2x128xf32, #tpu.memory_space<vmem>>, vector<2x128xf32>,
    return
  }
  func.func @transform_0(%arg0: i32) -> (i32, i32) {
    %c0_i32 = arith.constant 0 : i32
    %c0_i32_0 = arith.constant 0 : i32
    return %arg0, %c0_i32 : i32, i32
  }
  func.func @transform_1(%arg0: i32) -> (i32, i32) {
    %c0_i32 = arith.constant 0 : i32
    %c0_i32_0 = arith.constant 0 : i32
    %c0_i32_1 = arith.constant 0 : i32
    return %c0_i32, %c0_i32_0 : i32, i32
  }
  func.func @transform_2(%arg0: i32) -> (i32, i32) {
    %c0_i32 = arith.constant 0 : i32
    %c0_i32_0 = arith.constant 0 : i32
    %c0_i32_1 = arith.constant 0 : i32
    return %c0_i32, %c0_i32_0 : i32, i32
  }
  func.func @transform_3(%arg0: i32) -> (i32, i32) {
    %c0_i32 = arith.constant 0 : i32
    %c0_i32_0 = arith.constant 0 : i32
    %c0_i32_1 = arith.constant 0 : i32
    return %c0_i32, %c0_i32_0 : i32, i32
  }
  func.func @transform_4(%arg0: i32) -> (i32, i32) {
    %c0_i32 = arith.constant 0 : i32
    %c0_i32_0 = arith.constant 0 : i32
    %c0_i32_1 = arith.constant 0 : i32
    return %c0_i32, %c0_i32_0 : i32, i32
  }
  func.func @transform_5(%arg0: i32) -> (i32, i32) {
    %c0_i32 = arith.constant 0 : i32
    %c0_i32_0 = arith.constant 0 : i32
    %c0_i32_1 = arith.constant 0 : i32
    return %c0_i32, %c0_i32_0 : i32, i32
  }
  func.func @transform_6(%arg0: i32) -> (i32, i32) {
    %c0_i32 = arith.constant 0 : i32
    %c0_i32_0 = arith.constant 0 : i32
    return %arg0, %c0_i32 : i32, i32
  }
}

</mosaic_0001>

<bundles_post_ra>
// kernel: tpu_custom_call.1
= control target key start
LH: loop header
LB: loop body
LE: loop exit
PB: predicated region body
PF: predicated region fallthrough
CT: control target
= control target key end

     0   :  { %11 = vsyncpa [#allocation3], 0  ;;  %s2060_s0 = inlined_call_operand.hbm [shape: f32[2,768], index: 0, kind: input, shape index: {}]   ;;  %s2061_s1 = inlined_call_operand.vmem [shape: f32[128,3], index: 1, kind: input, shape index: {}]   ;;  %s2062_s2 = inlined_call_operand.vmem [shape: f32[128,128], index: 2, kind: input, shape index: {}]   ;;  %s2063_s3 = inlined_call_operand.vmem [shape: f32[1,128], index: 3, kind: input, shape index: {}]   ;;  %s2064_s4 = inlined_call_operand.hbm [shape: f32[128,128], index: 4, kind: input, shape index: {}]   ;;  %s2065_s5 = inlined_call_operand.vmem [shape: f32[1,128], index: 5, kind: input, shape index: {}]   ;;  %s2066_s6 = inlined_call_operand.hbm [shape: f32[2,128], index: 6, kind: output, shape index: {}]  }
   0x1   :  { %12 = vsyncpa [#allocation6], 0 }
   0x2   :  { %13 = vsyncpa [#allocation4], 0  ;;  %s19_s23 = sshll.u32 %s2060_s0, 4  ;;  %s1187_s24 = smov [#allocation2]   ;;  %s20_s23 = int_to_ptr.hbm [resolvable:$true] %s19_s23 }
   0x3   :  { %s21_s25 = sshll.u32 %s1187_s24, 4  ;;  %s35_s28 = sshll.u32 %s2064_s4, 4  ;;  %s22_s25 = int_to_ptr.vmem [resolvable:$true] %s21_s25  ;;  %s36_s28 = int_to_ptr.hbm [resolvable:$true] %s35_s28 }
   0x4   :  { %24 = dma.hbm_to_vmem [thread:$0]  %s20_s23, 192, %s22_s25, [#allocation3]  }
   0x5   :  { %s1188_s29 = smov [#allocation5]   ;;  %s1189_s7 = smov 128  }
   0x6   :  { %s37_s30 = sshll.u32 %s1188_s29, 4  ;;  %s1190_s8 = smov 8   ;;  %s38_s30 = int_to_ptr.vmem [resolvable:$true] %s37_s30 }
   0x7   :  { %43 = dma.hbm_to_vmem [thread:$0]  %s36_s28, 2048, %s38_s30, [#allocation6], %s1189_s7, %s1189_s7, %s1190_s8  }
   0x8   :  { %1181 = dma.done.wait [#allocation3], 192  }
   0x9   :  { %1182 = vsyncadd [#allocation3], 4294967104 }
   0xa   :  { %1183 = dma.done.wait [#allocation6], 2048  }
   0xb   :  { %1184 = vsyncadd [#allocation6], 4294965248  ;;  %v1191_v0 = vmov 0   ;;  %v58_v1 = vld [vmem:[%s2061_s1 + $0x20] sm:$0xff]  ;;  %v56_v2 = vld [vmem:[%s2061_s1 + $0x10] sm:$0xff]  ;;  %v1192_v6 = vmov 1  }
   0xc   :  { %1098 = vset.pattern.permute.xlu2 %v1191_v0  ;;  %1097 = vset.pattern.permute.xlu1 %v1191_v0  ;;  %v54_v3 = vld [vmem:[%s2061_s1] sm:$0xff]  ;;  %v57_v4 = vld [vmem:[%s2061_s1 + $0x18] sm:$0xff]  ;;  %v55_v5 = vld [vmem:[%s2061_s1 + $0x8] sm:$0xff]  ;;  %v1193_v7 = vmov 2   ;;  %vm81_vm0 = vcmask 1041409   ;;  %vm83_vm1 = vcmask 1043459  }
   0xd   :  { %1096 = vset.pattern.permute.xlu0 %v1191_v0  ;;  %114 = vperm.xlu2 %1098, %v58_v1   ;;  %v59_v8 = vld [vmem:[%s2061_s1 + $0x28] sm:$0xff]  ;;  %v60_v9 = vld [vmem:[%s2061_s1 + $0x30] sm:$0xff]  ;;  %v61_v10 = vld [vmem:[%s2061_s1 + $0x38] sm:$0xff]  ;;  %vm75_vm2 = vcmask 1040384   ;;  %vm77_vm3 = vcmask 1042434   ;;  %vm85_vm4 = vcmask 1042433  }
   0xe   :  { %104 = vperm.xlu1 %1097, %v56_v2   ;;  %94 = vperm.xlu0 %1096, %v54_v3   ;;  %v62_v11 = vld [vmem:[%s2061_s1 + $0x40] sm:$0xff]  ;;  %v63_v12 = vld [vmem:[%s2061_s1 + $0x48] sm:$0xff]  ;;  %v64_v13 = vld [vmem:[%s2061_s1 + $0x50] sm:$0xff]  ;;  %vm79_vm5 = vcmask 1041408   ;;  %vm917_vm6 = vcmask 130112   ;;  %vm921_vm7 = vcmask 195712  }
   0xf   :  { %v65_v14 = vld [vmem:[%s2061_s1 + $0x58] sm:$0xff]  ;;  %v66_v15 = vld [vmem:[%s2061_s1 + $0x60] sm:$0xff]  ;;  %v67_v17 = vld [vmem:[%s2061_s1 + $0x68] sm:$0xff]  ;;  %vm925_vm8 = vcmask 261312   ;;  %vm929_vm9 = vcmask 326912   ;;  %vm933_vm10 = vcmask 392512  }
  0x10   :  { %v68_v19 = vld [vmem:[%s2061_s1 + $0x70] sm:$0xff]  ;;  %v69_v21 = vld [vmem:[%s2061_s1 + $0x78] sm:$0xff]  ;;  %v70_v23 = vld [vmem:[#allocation2] sm:$0x3]  ;;  %vm937_vm11 = vcmask 458112   ;;  %vm941_vm12 = vcmask 523712  }
  0x11   :  { %v72_v26 = vrot.slane %v70_v23, 1  ;;  %v524_v27 = vld [vmem:[#allocation2 + $0x2] sm:$0x3]  ;;  %v73_v28 = vrot.slane %v70_v23, 2  ;;  %v74_v29 = vrot.slane %v70_v23, 3  ;;  %vm945_vm13 = vcmask 589312  }
  0x12   :  { %v526_v30 = vrot.slane %v524_v27, 1  ;;  %v204_v31 = vld [vmem:[#allocation2 + $0x4] sm:$0x3]  ;;  %v527_v33 = vrot.slane %v524_v27, 2  ;;  %v528_v34 = vrot.slane %v524_v27, 3  ;;  %vm949_vm14 = vcmask 654912  }
  0x13   :  { %v82_v32 = vsel %vm81_vm0, %v70_v23, %v72_v26  ;;  %v84_v36 = vsel %vm83_vm1, %v73_v28, %v74_v29  ;;  %v206_v38 = vrot.slane %v204_v31, 1  ;;  %v207_v39 = vrot.slane %v204_v31, 2  ;;  %v572_v41 = vld [vmem:[#allocation2 + $0x6] sm:$0x3]  ;;  %v348_v43 = vld [vmem:[#allocation2 + $0x8] sm:$0x3] }
  0x14   :  { %v208_v40 = vrot.slane %v204_v31, 3  ;;  %v532_v42 = vsel %vm81_vm0, %v524_v27, %v526_v30  ;;  %v76_v44 = vsel %vm75_vm2, %v70_v23, %v72_v26  ;;  %v78_v45 = vsel %vm77_vm3, %v73_v28, %v74_v29  ;;  %v652_v48 = vld [vmem:[#allocation2 + $0xa] sm:$0x3]  ;;  %s1194_s20 = smov [#allocation7]   ;;  %s1077_s24 = sshll.u32 %s2066_s6, 4  ;;  %s1078_s24 = int_to_ptr.hbm [resolvable:$true] %s1077_s24 }
  0x15   :  { %1099 = vset.pattern.permute.xlu2 %v1192_v6  ;;  %v86_v46 = vsel %vm85_vm4, %v82_v32, %v84_v36  ;;  %v533_v47 = vsel %vm83_vm1, %v527_v33, %v528_v34  ;;  %v574_v50 = vrot.slane %v572_v41, 1  ;;  %v575_v51 = vrot.slane %v572_v41, 2  ;;  %s1075_s21 = sshll.u32 %s1194_s20, 4  ;;  %s1076_s21 = int_to_ptr.vmem [resolvable:$true] %s1075_s21 }
  0x16   :  { %109 = vperm.xlu1 %1097, %v57_v4   ;;  %99 = vperm.xlu0 %1096, %v55_v5   ;;  %v576_v52 = vrot.slane %v572_v41, 3  ;;  %v212_v53 = vsel %vm81_vm0, %v204_v31, %v206_v38  ;;  %v213_v54 = vsel %vm83_vm1, %v207_v39, %v208_v40  ;;  %v350_v55 = vrot.slane %v348_v43, 1 }
  0x17   :  { %221 = vperm.xlu2 %1099, %v54_v3   ;;  %v351_v56 = vrot.slane %v348_v43, 2  ;;  %v352_v57 = vrot.slane %v348_v43, 3  ;;  %v654_v58 = vrot.slane %v652_v48, 1  ;;  %v655_v59 = vrot.slane %v652_v48, 2 }
  0x18   :  { %v656_v60 = vrot.slane %v652_v48, 3  ;;  %v529_v61 = vsel %vm75_vm2, %v524_v27, %v526_v30  ;;  %v530_v62 = vsel %vm77_vm3, %v527_v33, %v528_v34  ;;  %v580_v63 = vsel %vm81_vm0, %v572_v41, %v574_v50 }
  0x19   :  { %v578_v23 = vsel %vm77_vm3, %v575_v51, %v576_v52  ;;  %v353_v26 = vsel %vm75_vm2, %v348_v43, %v350_v55  ;;  %v354_v27 = vsel %vm77_vm3, %v351_v56, %v352_v57  ;;  %v657_v32 = vsel %vm75_vm2, %v652_v48, %v654_v58 }
  0x1a   :  { %v658_v33 = vsel %vm77_vm3, %v655_v59, %v656_v60  ;;  %vm953_vm15 = vcmask 720512  }
  0x1e   :  { %1101 = vset.pattern.permute.xlu1 %v1192_v6  ;;  %1100 = vset.pattern.permute.xlu0 %v1192_v6 }
  0x1f   :  { %229 = vperm.xlu1 %1101, %v56_v2   ;;  %233 = vperm.xlu2 %1099, %v57_v4  }
  0x20   :  { %225 = vperm.xlu0 %1100, %v55_v5  }
  0x27   :  { %1102 = vset.pattern.permute.xlu1 %v1193_v7  ;;  %1103 = vset.pattern.permute.xlu2 %v1193_v7 }
  0x28   :  { %237 = vperm.xlu0 %1100, %v58_v1   ;;  %365 = vperm.xlu1 %1102, %v54_v3   ;;  %v87_v3 = vrot.slane %v86_v46, 1 }
  0x29   :  { %369 = vperm.xlu2 %1103, %v55_v5   ;;  %v214_v5 = vsel %vm85_vm4, %v212_v53, %v213_v54 }
  0x30   :  { %241 = vperm.xlu0 %1100, %v59_v8   ;;  %373 = vperm.xlu1 %1102, %v56_v2   ;;  %v80_v2 = vsel %vm79_vm5, %v76_v44, %v78_v45  ;;  %v659_v45 = vsel %vm79_vm5, %v657_v32, %v658_v33 }
  0x31   :  { %1104 = vset.pattern.permute.xlu2 %v1191_v0  ;;  %v581_v0 = vsel %vm83_vm1, %v575_v51, %v576_v52  ;;  %v1345_v34 = vperm.slane %v80_v2, 0 }
  0x32   :  { %119 = vperm.xlu2 %1104, %v59_v8  }
  0x38   :  { %245 = vperm.xlu0 %1100, %v60_v9   ;;  %377 = vperm.xlu1 %1102, %v57_v4   ;;  %v534_v4 = vsel %vm85_vm4, %v532_v42, %v533_v47 }
  0x3a   :  { %124 = vperm.xlu2 %1104, %v60_v9  }
  0x40   :  { %249 = vperm.xlu0 %1100, %v61_v10   ;;  %381 = vperm.xlu1 %1102, %v58_v1  }
  0x42   :  { %129 = vperm.xlu2 %1104, %v61_v10  }
  0x48   :  { %253 = vperm.xlu0 %1100, %v62_v11   ;;  %385 = vperm.xlu1 %1102, %v59_v8   ;;  %v357_v8 = vsel %vm83_vm1, %v351_v56, %v352_v57  ;;  %v1376_v56 = vperm.slane %v659_v45, 0 }
  0x4a   :  { %134 = vperm.xlu2 %1104, %v62_v11  }
  0x50   :  { %257 = vperm.xlu0 %1100, %v63_v12   ;;  %389 = vperm.xlu1 %1102, %v60_v9   ;;  %v660_v9 = vsel %vm81_vm0, %v652_v48, %v654_v58 }
  0x52   :  { %139 = vperm.xlu2 %1104, %v63_v12  }
  0x58   :  { %261 = vperm.xlu0 %1100, %v64_v13   ;;  %393 = vperm.xlu1 %1102, %v61_v10   ;;  %v661_v10 = vsel %vm83_vm1, %v655_v59, %v656_v60  ;;  %vm957_vm1 = vcmask 786112  }
  0x59   :  { %v662_v29 = vsel %vm85_vm4, %v660_v9, %v661_v10 }
  0x5a   :  { %144 = vperm.xlu2 %1104, %v64_v13  }
  0x60   :  { %265 = vperm.xlu0 %1100, %v65_v14   ;;  %397 = vperm.xlu1 %1102, %v62_v11   ;;  %v531_v11 = vsel %vm79_vm5, %v529_v61, %v530_v62 }
  0x61   :  { %v1351_v42 = vperm.slane %v531_v11, 0 }
  0x62   :  { %149 = vperm.xlu2 %1104, %v65_v14  }
  0x67   :  { %v1277_v16 = vpop.permute.xlu2 %114 }
  0x68   :  { %269 = vperm.xlu0 %1100, %v66_v15   ;;  %401 = vperm.xlu1 %1102, %v63_v12   ;;  %v209_v12 = vsel %vm75_vm2, %v204_v31, %v206_v38  ;;  %v1348_v38 = vperm.slane %v87_v3, 0  ;;  %v1372_v54 = vmul.f32 %v1277_v16, %v1345_v34  ;;  %v1386_v59 = vmul.f32 %v1351_v42, %v1277_v16 }
  0x6a   :  { %154 = vperm.xlu2 %1104, %v66_v15   ;;  %v1382_v58 = vmul.f32 %v1277_v16, %v1348_v38  ;;  %2075 = vst [vmem:[#allocation14_spill] sm:$0xff] %v1386_v59 }
  0x6c   :  { %2074 = vst [vmem:[#allocation13_spill] sm:$0xff] %v1382_v58 }
  0x70   :  { %273 = vperm.xlu0 %1100, %v67_v17   ;;  %405 = vperm.xlu1 %1102, %v64_v13   ;;  %v210_v13 = vsel %vm77_vm3, %v207_v39, %v208_v40  ;;  %v355_v39 = vsel %vm79_vm5, %v353_v26, %v354_v27  ;;  %vm965_vm3 = vcmask 917312  }
  0x71   :  { %v1282_v18 = vpop.permute.xlu2 %221  ;;  %v211_v30 = vsel %vm79_vm5, %v209_v12, %v210_v13  ;;  %v1366_v52 = vperm.slane %v355_v39, 0 }
  0x72   :  { %159 = vperm.xlu2 %1104, %v67_v17   ;;  %v1355_v44 = vperm.slane %v211_v30, 0 }
  0x74   :  { %v284_v61 = vmul.f32 %v1282_v18, %v1355_v44 }
  0x78   :  { %277 = vperm.xlu0 %1100, %v68_v19   ;;  %409 = vperm.xlu1 %1102, %v65_v14   ;;  %v582_v14 = vsel %vm85_vm4, %v580_v63, %v581_v0 }
  0x79   :  { %v1287_v20 = vpop.permute.xlu2 %233  ;;  %v583_v31 = vrot.slane %v582_v14, 1 }
  0x7a   :  { %164 = vperm.xlu2 %1104, %v68_v19   ;;  %v287_v2 = vmul.f32 %v1287_v20, %v1355_v44 }
  0x80   :  { %281 = vperm.xlu0 %1100, %v69_v21   ;;  %v1292_v22 = vpop.permute.xlu1 %104  ;;  %413 = vperm.xlu1 %1102, %v66_v15   ;;  %v1294_v24 = vpop.permute.xlu0 %94 }
  0x81   :  { %v172_v9 = vmul.f32 %v1294_v24, %v1345_v34  ;;  %v540_v10 = vmul.f32 %v1351_v42, %v1294_v24 }
  0x82   :  { %169 = vperm.xlu2 %1104, %v69_v21  }
  0x83   :  { %v1296_v25 = vpop.permute.xlu2 %369 }
  0x84   :  { %v429_v12 = vmul.f32 %v1296_v25, %v1366_v52  ;;  %v669_v14 = vmul.f32 %v1376_v56, %v1296_v25 }
  0x88   :  { %1106 = vset.pattern.permute.xlu0 %v1193_v7  ;;  %v1300_v35 = vpop.permute.xlu1 %109  ;;  %417 = vperm.xlu1 %1102, %v67_v17   ;;  %v1303_v37 = vpop.permute.xlu0 %99  ;;  %v535_v17 = vrot.slane %v534_v4, 1 }
  0x89   :  { %425 = vperm.xlu0 %1106, %v69_v21   ;;  %v577_v21 = vsel %vm75_vm2, %v572_v41, %v574_v50  ;;  %v663_v41 = vrot.slane %v662_v29, 1  ;;  %v1364_v50 = vperm.slane %v583_v31, 0  ;;  %v191_v26 = vmul.f32 %v1300_v35, %v1348_v38 }
  0x8a   :  { %1105 = vset.pattern.permute.xlu2 %v1193_v7  ;;  %v356_v7 = vsel %vm81_vm0, %v348_v43, %v350_v55  ;;  %v579_v36 = vsel %vm79_vm5, %v577_v21, %v578_v23  ;;  %v1353_v43 = vperm.slane %v535_v17, 0  ;;  %v175_v23 = vmul.f32 %v1300_v35, %v1345_v34 }
  0x8b   :  { %421 = vperm.xlu2 %1105, %v68_v19   ;;  %v215_v19 = vrot.slane %v214_v5, 1  ;;  %v358_v28 = vsel %vm85_vm4, %v356_v7, %v357_v8  ;;  %v1362_v48 = vperm.slane %v579_v36, 0  ;;  %v1378_v57 = vperm.slane %v663_v41, 0 }
  0x8c   :  { %v1311_v49 = vpop.permute.xlu2 %119  ;;  %v359_v40 = vrot.slane %v358_v28, 1  ;;  %v1390_v60 = vmul.f32 %v1353_v43, %v1277_v16  ;;  %v604_v0 = vmul.f32 %v1364_v50, %v1282_v18  ;;  %v607_v4 = vmul.f32 %v1364_v50, %v1287_v20 }
  0x8d   :  { %v1360_v47 = vperm.slane %v215_v19, 0  ;;  %v588_v63 = vmul.f32 %v1362_v48, %v1282_v18  ;;  %v591_v16 = vmul.f32 %v1362_v48, %v1287_v20  ;;  %v174_v5 = vmul.f32 %v1292_v22, %v1345_v34 }
  0x8e   :  { %v1374_v55 = vperm.slane %v359_v40, 0  ;;  %2076 = vst [vmem:[#allocation15_spill] sm:$0xff] %v1390_v60  ;;  %v1412_v7 = vmul.f32 %v1292_v22, %v1348_v38  ;;  %v1418_v8 = vmul.f32 %v1353_v43, %v1292_v22  ;;  %v556_v11 = vmul.f32 %v1353_v43, %v1294_v24 }
  0x8f   :  { %v300_v62 = vmul.f32 %v1282_v18, %v1360_v47  ;;  %v303_v3 = vmul.f32 %v1287_v20, %v1360_v47  ;;  %v542_v18 = vmul.f32 %v1351_v42, %v1292_v22  ;;  %v188_v20 = vmul.f32 %v1294_v24, %v1348_v38 }
  0x90   :  { %2073 = vst [vmem:[#allocation12_spill] sm:$0xff] %v1374_v55  ;;  %v1434_v22 = vmul.f32 %v1296_v25, %v1374_v55  ;;  %v1446_v24 = vmul.f32 %v1378_v57, %v1296_v25  ;;  %v543_v27 = vmul.f32 %v1351_v42, %v1300_v35  ;;  %v173_v29 = vmul.f32 %v1303_v37, %v1345_v34 }
  0x91   :  { %v1319_v1 = vpop.permute.xlu1 %229  ;;  %v541_v30 = vmul.f32 %v1351_v42, %v1303_v37  ;;  %v332_v36 = vadd.f32 %v300_v62, %v188_v20  ;;  %v636_v39 = vadd.f32 %v604_v0, %v556_v11  ;;  %v316_v40 = vadd.f32 %v284_v61, %v172_v9 }
  0x92   :  { %v1324_v6 = vpop.permute.xlu0 %225  ;;  %v620_v41 = vadd.f32 %v588_v63, %v540_v10  ;;  %v559_v60 = vmul.f32 %v1353_v43, %v1300_v35  ;;  %v189_v58 = vmul.f32 %v1303_v37, %v1348_v38  ;;  %v1474_v62 = vadd.f32 %v303_v3, %v191_v26 }
  0x93   :  { %v285_v17 = vmul.f32 %v1324_v6, %v1355_v44  ;;  %v589_v19 = vmul.f32 %v1362_v48, %v1324_v6  ;;  %v286_v61 = vmul.f32 %v1319_v1, %v1355_v44  ;;  %v590_v35 = vmul.f32 %v1362_v48, %v1319_v1 }
  0x94   :  { %v1334_v15 = vpop.permute.xlu2 %124  ;;  %v1490_v10 = vmul.f32 %v1311_v49, %v1345_v34  ;;  %v302_v11 = vmul.f32 %v1319_v1, %v1360_v47  ;;  %vm961_vm2 = vcmask 851712   ;;  %vm969_vm4 = vcmask 982912  }
  0x95   :  { %v317_v45 = vadd.f32 %v285_v17, %v173_v29  ;;  %v606_v17 = vmul.f32 %v1364_v50, %v1319_v1  ;;  %v318_v29 = vadd.f32 %v286_v61, %v174_v5  ;;  %vm973_vm5 = vcmask 1048512  }
  0x97   :  { %v461_v3 = vadd.f32 %v429_v12, %v317_v45  ;;  %v1526_v45 = vmul.f32 %v1334_v15, %v1348_v38 }
  0x9a   :  { %v1358_v46 = vpop.permute.xlu0 %237  ;;  %v366_v51 = vpop.permute.xlu1 %365 }
  0x9b   :  { %v428_v25 = vmul.f32 %v366_v51, %v1366_v52  ;;  %v668_v31 = vmul.f32 %v1376_v56, %v366_v51  ;;  %v444_v32 = vmul.f32 %v366_v51, %v1374_v55  ;;  %v684_v33 = vmul.f32 %v1378_v57, %v366_v51 }
  0x9c   :  { %v1368_v53 = vpop.permute.xlu2 %129  ;;  %v1472_v51 = vadd.f32 %v591_v16, %v543_v27 }
  0x9d   :  { %2072 = vst [vmem:[#allocation11_spill] sm:$0xff] %v1368_v53  ;;  %v557_v53 = vmul.f32 %v1353_v43, %v1303_v37  ;;  %v460_v55 = vadd.f32 %v428_v25, %v316_v40  ;;  %v700_v59 = vadd.f32 %v668_v31, %v620_v41  ;;  %v476_v0 = vadd.f32 %v444_v32, %v332_v36 }
  0x9e   :  { %v716_v9 = vadd.f32 %v684_v33, %v636_v39  ;;  %v301_v37 = vmul.f32 %v1324_v6, %v1360_v47  ;;  %v493_v25 = vmax.f32 %v461_v3, 0.0  ;;  %v288_v33 = vmul.f32 %v1358_v46, %v1355_v44 }
  0x9f   :  { %v732_v26 = vmax.f32 %v700_v59, 0.0  ;;  %v508_v27 = vmax.f32 %v476_v0, 0.0  ;;  %v561_v59 = vmul.f32 %v1353_v43, %v1311_v49  ;;  %v334_v40 = vadd.f32 %v302_v11, %v1412_v7 }
  0xa0   :  { %v333_v32 = vadd.f32 %v301_v37, %v189_v58  ;;  %v638_v41 = vadd.f32 %v606_v17, %v1418_v8  ;;  %v320_v7 = vadd.f32 %v288_v33, %v1372_v54  ;;  %v1544_v17 = vmul.f32 %v1353_v43, %v1334_v15 }
  0xa2   :  { %v1430_v13 = vpop.permute.xlu0 %241  ;;  %v1442_v21 = vpop.permute.xlu1 %373 }
  0xa3   :  { %2077 = vst [vmem:[#allocation16_spill] sm:$0xff] %v1430_v13  ;;  %v1470_v13 = vadd.f32 %v287_v2, %v175_v23  ;;  %v605_v2 = vmul.f32 %v1364_v50, %v1324_v6  ;;  %v1498_v23 = vadd.f32 %v607_v4, %v559_v60  ;;  %v430_v6 = vmul.f32 %v1442_v21, %v1366_v52 }
  0xa4   :  { %v1454_v28 = vpop.permute.xlu2 %134  ;;  %v670_v12 = vmul.f32 %v1376_v56, %v1442_v21  ;;  %v193_v60 = vmul.f32 %v1311_v49, %v1348_v38  ;;  %v1508_v4 = vmul.f32 %v1351_v42, %v1311_v49 }
  0xa5   :  { %2078 = vst [vmem:[#allocation17_spill] sm:$0xff] %v1454_v28  ;;  %v621_v28 = vadd.f32 %v589_v19, %v541_v30  ;;  %v622_v30 = vadd.f32 %v590_v35, %v542_v18  ;;  %v637_v1 = vadd.f32 %v605_v2, %v557_v53  ;;  %v462_v18 = vadd.f32 %v430_v6, %v318_v29  ;;  %v2079_v2 = vld [vmem:[#allocation14_spill] sm:$0xff] }
  0xa6   :  { %v1518_v53 = vmul.f32 %v1334_v15, %v1345_v34  ;;  %v477_v35 = vadd.f32 %v1434_v22, %v333_v32 }
  0xa7   :  { %v701_v20 = vadd.f32 %v669_v14, %v621_v28  ;;  %v492_v14 = vmax.f32 %v460_v55, 0.0  ;;  %v748_v28 = vmax.f32 %v716_v9, 0.0  ;;  %v592_v55 = vmul.f32 %v1362_v48, %v1358_v46 }
  0xa8   :  { %v702_v58 = vadd.f32 %v670_v12, %v622_v30  ;;  %v717_v0 = vadd.f32 %v1446_v24, %v637_v1  ;;  %v494_v11 = vmax.f32 %v462_v18, 0.0  ;;  %v1540_v24 = vmul.f32 %v1351_v42, %v1334_v15  ;;  %v2082_v18 = vld [vmem:[#allocation11_spill] sm:$0xff] }
  0xa9   :  { %v733_v31 = vmax.f32 %v701_v20, 0.0  ;;  %v764_v5 = vadd.f32 %v732_v26, %v492_v14  ;;  %v780_v39 = vadd.f32 %v748_v28, %v508_v27  ;;  %v624_v8 = vadd.f32 %v592_v55, %v2079_v2  ;;  %v2080_v14 = vld [vmem:[#allocation12_spill] sm:$0xff] }
  0xaa   :  { %v1480_v63 = vpop.permute.xlu0 %245  ;;  %v1486_v16 = vpop.permute.xlu1 %377  ;;  %v734_v22 = vmax.f32 %v702_v58, 0.0  ;;  %v446_v26 = vmul.f32 %v1442_v21, %v2080_v14  ;;  %v686_v27 = vmul.f32 %v1378_v57, %v1442_v21  ;;  %v509_v28 = vmax.f32 %v477_v35, 0.0  ;;  %v2081_v30 = vld [vmem:[#allocation16_spill] sm:$0xff] }
  0xab   :  { %v765_v49 = vadd.f32 %v733_v31, %v493_v25  ;;  %v431_v3 = vmul.f32 %v1486_v16, %v1366_v52  ;;  %v671_v20 = vmul.f32 %v1376_v56, %v1486_v16  ;;  %v749_v29 = vmax.f32 %v717_v0, 0.0 }
  0xac   :  { %v1496_v19 = vpop.permute.xlu2 %139  ;;  %v305_v25 = vmul.f32 %v2081_v30, %v1360_v47  ;;  %v609_v31 = vmul.f32 %v1364_v50, %v2081_v30  ;;  %v304_v1 = vmul.f32 %v1358_v46, %v1360_v47  ;;  %v766_v33 = vadd.f32 %v734_v22, %v494_v11 }
  0xad   :  { %v463_v55 = vadd.f32 %v431_v3, %v1470_v13  ;;  %v608_v21 = vmul.f32 %v1364_v50, %v1358_v46  ;;  %v1564_v58 = vmul.f32 %v2082_v18, %v1345_v34  ;;  %v1574_v0 = vmul.f32 %v1351_v42, %v2082_v18 }
  0xae   :  { %v718_v46 = vadd.f32 %v686_v27, %v638_v41  ;;  %v337_v2 = vadd.f32 %v305_v25, %v193_v60  ;;  %v687_v60 = vmul.f32 %v1378_v57, %v1486_v16 }
  0xaf   :  { %v495_v11 = vmax.f32 %v463_v55, 0.0 }
  0xb0   :  { %v750_v27 = vmax.f32 %v718_v46, 0.0 }
  0xb2   :  { %v1520_v36 = vpop.permute.xlu0 %249  ;;  %v382_v61 = vpop.permute.xlu1 %381  ;;  %796 = vadd.xlane.f32.xlu1 %v764_v5  ;;  %v703_v5 = vadd.f32 %v671_v20, %v1472_v51  ;;  %v781_v51 = vadd.f32 %v749_v29, %v509_v28  ;;  %v593_v29 = vmul.f32 %v1362_v48, %v2081_v30 }
  0xb3   :  { %v432_v9 = vmul.f32 %v382_v61, %v1366_v52  ;;  %v672_v37 = vmul.f32 %v1376_v56, %v382_v61  ;;  %828 = vadd.xlane.f32.xlu0 %v780_v39  ;;  %v1568_v39 = vmul.f32 %v2082_v18, %v1348_v38  ;;  %v448_v3 = vmul.f32 %v382_v61, %v2080_v14 }
  0xb4   :  { %798 = vadd.xlane.f32.xlu2 %v765_v49  ;;  %v1546_v54 = vpop.permute.xlu2 %144  ;;  %v688_v20 = vmul.f32 %v1378_v57, %v382_v61  ;;  %v735_v22 = vmax.f32 %v703_v5, 0.0  ;;  %v289_v61 = vmul.f32 %v2081_v30, %v1355_v44  ;;  %v594_v30 = vmul.f32 %v1362_v48, %v1480_v63 }
  0xb5   :  { %v464_v6 = vadd.f32 %v432_v9, %v320_v7  ;;  %v704_v12 = vadd.f32 %v672_v37, %v624_v8  ;;  %v478_v9 = vadd.f32 %v446_v26, %v334_v40  ;;  %v641_v8 = vadd.f32 %v609_v31, %v561_v59  ;;  %v2084_v40 = vld [vmem:[#allocation15_spill] sm:$0xff] }
  0xb6   :  { %v640_v41 = vadd.f32 %v608_v21, %v2084_v40  ;;  %v447_v26 = vmul.f32 %v1486_v16, %v2080_v14  ;;  %v2085_v16 = vld [vmem:[#allocation17_spill] sm:$0xff]  ;;  %v626_v40 = vadd.f32 %v594_v30, %v1540_v24  ;;  %v1646_v24 = vmul.f32 %v1351_v42, %v1496_v19 }
  0xb7   :  { %v496_v15 = vmax.f32 %v464_v6, 0.0  ;;  %v736_v32 = vmax.f32 %v704_v12, 0.0  ;;  %v510_v59 = vmax.f32 %v478_v9, 0.0  ;;  %v1598_v21 = vmul.f32 %v2085_v16, %v1345_v34 }
  0xb8   :  { %v720_v5 = vadd.f32 %v688_v20, %v640_v41  ;;  %v321_v20 = vadd.f32 %v289_v61, %v1490_v10 }
  0xb9   :  { %v768_v35 = vadd.f32 %v736_v32, %v496_v15  ;;  %v2083_v15 = vld [vmem:[#allocation13_spill] sm:$0xff] }
  0xba   :  { %v1570_v49 = vpop.permute.xlu0 %253  ;;  %v386_v13 = vpop.permute.xlu1 %385  ;;  %800 = vadd.xlane.f32.xlu1 %v766_v33  ;;  %v336_v28 = vadd.f32 %v304_v1, %v2083_v15  ;;  %v1594_v1 = vmul.f32 %v1353_v43, %v2082_v18  ;;  %v767_v33 = vadd.f32 %v735_v22, %v495_v11  ;;  %v1608_v18 = vmul.f32 %v2085_v16, %v1348_v38 }
  0xbb   :  { %v449_v37 = vmul.f32 %v386_v13, %v2080_v14  ;;  %v689_v7 = vmul.f32 %v1378_v57, %v386_v13  ;;  %804 = vadd.xlane.f32.xlu0 %v768_v35  ;;  %v290_v35 = vmul.f32 %v1480_v63, %v1355_v44  ;;  %v625_v11 = vadd.f32 %v593_v29, %v1508_v4 }
  0xbc   :  { %830 = vadd.xlane.f32.xlu2 %v781_v51  ;;  %v1590_v25 = vpop.permute.xlu2 %149  ;;  %v480_v55 = vadd.f32 %v448_v3, %v336_v28  ;;  %v1618_v3 = vmul.f32 %v1353_v43, %v2085_v16  ;;  %v610_v15 = vmul.f32 %v1364_v50, %v1480_v63  ;;  %v433_v10 = vmul.f32 %v386_v13, %v1366_v52 }
  0xbd   :  { %v481_v6 = vadd.f32 %v449_v37, %v337_v2  ;;  %v721_v12 = vadd.f32 %v689_v7, %v641_v8  ;;  %v782_v37 = vadd.f32 %v750_v27, %v510_v59  ;;  %v479_v7 = vadd.f32 %v447_v26, %v1474_v62 }
  0xbe   :  { %v719_v2 = vadd.f32 %v687_v60, %v1498_v23  ;;  %v1614_v8 = vmul.f32 %v1351_v42, %v2085_v16  ;;  %v512_v62 = vmax.f32 %v480_v55, 0.0  ;;  %v752_v23 = vmax.f32 %v720_v5, 0.0 }
  0xbf   :  { %v513_v31 = vmax.f32 %v481_v6, 0.0  ;;  %v753_v32 = vmax.f32 %v721_v12, 0.0  ;;  %v306_v12 = vmul.f32 %v1480_v63, %v1360_v47  ;;  %v322_v28 = vadd.f32 %v290_v35, %v1518_v53 }
  0xc0   :  { %v673_v4 = vmul.f32 %v1376_v56, %v386_v13  ;;  %v511_v41 = vmax.f32 %v479_v7, 0.0  ;;  %v751_v26 = vmax.f32 %v719_v2, 0.0  ;;  %v1634_v60 = vmul.f32 %v1496_v19, %v1345_v34 }
  0xc1   :  { %v785_v9 = vadd.f32 %v753_v32, %v513_v31  ;;  %v1638_v59 = vmul.f32 %v1496_v19, %v1348_v38  ;;  %v291_v63 = vmul.f32 %v1520_v36, %v1355_v44  ;;  %v595_v53 = vmul.f32 %v1362_v48, %v1520_v36 }
  0xc2   :  { %v1604_v51 = vpop.permute.xlu0 %257  ;;  %v390_v46 = vpop.permute.xlu1 %389  ;;  %802 = vadd.xlane.f32.xlu1 %v767_v33  ;;  %v784_v13 = vadd.f32 %v752_v23, %v512_v62  ;;  %v1650_v29 = vmul.f32 %v1353_v43, %v1496_v19  ;;  %v307_v31 = vmul.f32 %v1520_v36, %v1360_v47  ;;  %v611_v32 = vmul.f32 %v1364_v50, %v1520_v36 }
  0xc3   :  { %838 = vadd.xlane.f32.xlu0 %v785_v9  ;;  %v434_v22 = vmul.f32 %v390_v46, %v1366_v52  ;;  %v674_v6 = vmul.f32 %v1376_v56, %v390_v46  ;;  %v338_v5 = vadd.f32 %v306_v12, %v1526_v45  ;;  %v783_v35 = vadd.f32 %v751_v26, %v511_v41 }
  0xc4   :  { %832 = vadd.xlane.f32.xlu2 %v782_v37  ;;  %v1656_v33 = vpop.permute.xlu2 %154  ;;  %v465_v30 = vadd.f32 %v433_v10, %v321_v20  ;;  %v705_v9 = vadd.f32 %v673_v4, %v625_v11  ;;  %v642_v19 = vadd.f32 %v610_v15, %v1544_v17  ;;  %v323_v2 = vadd.f32 %v291_v63, %v1564_v58 }
  0xc5   :  { %v466_v27 = vadd.f32 %v434_v22, %v322_v28  ;;  %v706_v61 = vadd.f32 %v674_v6, %v626_v40  ;;  %v627_v36 = vadd.f32 %v595_v53, %v1574_v0  ;;  %v339_v11 = vadd.f32 %v307_v31, %v1568_v39 }
  0xc6   :  { %v643_v17 = vadd.f32 %v611_v32, %v1594_v1  ;;  %v450_v12 = vmul.f32 %v390_v46, %v2080_v14  ;;  %v690_v15 = vmul.f32 %v1378_v57, %v390_v46  ;;  %v497_v58 = vmax.f32 %v465_v30, 0.0 }
  0xc7   :  { %v498_v45 = vmax.f32 %v466_v27, 0.0  ;;  %v738_v62 = vmax.f32 %v706_v61, 0.0  ;;  %v737_v28 = vmax.f32 %v705_v9, 0.0  ;;  %v308_v0 = vmul.f32 %v1570_v49, %v1360_v47 }
  0xc8   :  { %v612_v40 = vmul.f32 %v1364_v50, %v1570_v49  ;;  %v1678_v41 = vmul.f32 %v1546_v54, %v1345_v34  ;;  %v1682_v46 = vmul.f32 %v1546_v54, %v1348_v38  ;;  %v1686_v63 = vmul.f32 %v1351_v42, %v1546_v54 }
  0xc9   :  { %v770_v39 = vadd.f32 %v738_v62, %v498_v45  ;;  %v1690_v53 = vmul.f32 %v1353_v43, %v1546_v54  ;;  %v292_v61 = vmul.f32 %v1570_v49, %v1355_v44  ;;  %v769_v32 = vadd.f32 %v737_v28, %v497_v58 }
  0xca   :  { %v1658_v55 = vpop.permute.xlu0 %261  ;;  %v394_v16 = vpop.permute.xlu1 %393  ;;  %836 = vadd.xlane.f32.xlu1 %v784_v13  ;;  %v340_v54 = vadd.f32 %v308_v0, %v1608_v18 }
  0xcb   :  { %v435_v37 = vmul.f32 %v394_v16, %v1366_v52  ;;  %v675_v7 = vmul.f32 %v1376_v56, %v394_v16  ;;  %v451_v22 = vmul.f32 %v394_v16, %v2080_v14  ;;  %v691_v6 = vmul.f32 %v1378_v57, %v394_v16 }
  0xcc   :  { %834 = vadd.xlane.f32.xlu2 %v783_v35  ;;  %v482_v16 = vadd.f32 %v450_v12, %v338_v5  ;;  %v722_v35 = vadd.f32 %v690_v15, %v642_v19  ;;  %v1696_v30 = vpop.permute.xlu2 %159  ;;  %v309_v15 = vmul.f32 %v1604_v51, %v1360_v47  ;;  %v324_v28 = vadd.f32 %v292_v61, %v1598_v21 }
  0xcd   :  { %v467_v23 = vadd.f32 %v435_v37, %v323_v2  ;;  %v707_v20 = vadd.f32 %v675_v7, %v627_v36  ;;  %v483_v1 = vadd.f32 %v451_v22, %v339_v11  ;;  %v723_v26 = vadd.f32 %v691_v6, %v643_v17 }
  0xce   :  { %v644_v7 = vadd.f32 %v612_v40, %v1618_v3  ;;  %v596_v2 = vmul.f32 %v1362_v48, %v1570_v49  ;;  %v1706_v36 = vmul.f32 %v1590_v25, %v1345_v34  ;;  %v1710_v22 = vmul.f32 %v1590_v25, %v1348_v38 }
  0xcf   :  { %v499_v10 = vmax.f32 %v467_v23, 0.0  ;;  %v739_v4 = vmax.f32 %v707_v20, 0.0  ;;  %v515_v5 = vmax.f32 %v483_v1, 0.0  ;;  %v755_v19 = vmax.f32 %v723_v26, 0.0 }
  0xd0   :  { %v1714_v6 = vmul.f32 %v1351_v42, %v1590_v25  ;;  %v514_v62 = vmax.f32 %v482_v16, 0.0  ;;  %v754_v23 = vmax.f32 %v722_v35, 0.0  ;;  %v293_v20 = vmul.f32 %v1604_v51, %v1355_v44 }
  0xd1   :  { %v771_v27 = vadd.f32 %v739_v4, %v499_v10  ;;  %v597_v11 = vmul.f32 %v1362_v48, %v1604_v51  ;;  %v787_v58 = vadd.f32 %v755_v19, %v515_v5  ;;  %v628_v0 = vadd.f32 %v596_v2, %v1614_v8 }
  0xd2   :  { %v1692_v13 = vpop.permute.xlu0 %265  ;;  %v398_v31 = vpop.permute.xlu1 %397  ;;  %808 = vadd.xlane.f32.xlu1 %v770_v39  ;;  %v1728_v40 = vmul.f32 %v1353_v43, %v1590_v25  ;;  %v613_v10 = vmul.f32 %v1364_v50, %v1604_v51  ;;  %v1734_v4 = vmul.f32 %v1656_v33, %v1345_v34  ;;  %v1740_v26 = vmul.f32 %v1656_v33, %v1348_v38 }
  0xd3   :  { %v452_v9 = vmul.f32 %v398_v31, %v2080_v14  ;;  %v692_v37 = vmul.f32 %v1378_v57, %v398_v31  ;;  %810 = vadd.xlane.f32.xlu0 %v771_v27  ;;  %v436_v45 = vmul.f32 %v398_v31, %v1366_v52  ;;  %v676_v49 = vmul.f32 %v1376_v56, %v398_v31 }
  0xd4   :  { %806 = vadd.xlane.f32.xlu2 %v769_v32  ;;  %v786_v8 = vadd.f32 %v754_v23, %v514_v62  ;;  %v325_v31 = vadd.f32 %v293_v20, %v1634_v60  ;;  %v629_v32 = vadd.f32 %v597_v11, %v1646_v24  ;;  %v1748_v16 = vmul.f32 %v1351_v42, %v1656_v33 }
  0xd5   :  { %v484_v18 = vadd.f32 %v452_v9, %v340_v54  ;;  %v724_v3 = vadd.f32 %v692_v37, %v644_v7  ;;  %v468_v27 = vadd.f32 %v436_v45, %v324_v28  ;;  %v708_v25 = vadd.f32 %v676_v49, %v628_v0  ;;  %v165_v54 = vpop.permute.xlu2 %164 }
  0xd6   :  { %v1752_v35 = vmul.f32 %v1353_v43, %v1656_v33  ;;  %v310_v9 = vmul.f32 %v1658_v55, %v1360_v47  ;;  %v341_v37 = vadd.f32 %v309_v15, %v1638_v59  ;;  %v614_v5 = vmul.f32 %v1364_v50, %v1658_v55 }
  0xd7   :  { %v516_v17 = vmax.f32 %v484_v18, 0.0  ;;  %v756_v12 = vmax.f32 %v724_v3, 0.0  ;;  %v500_v19 = vmax.f32 %v468_v27, 0.0  ;;  %v740_v18 = vmax.f32 %v708_v25, 0.0 }
  0xd8   :  { %v645_v33 = vadd.f32 %v613_v10, %v1650_v29  ;;  %v294_v3 = vmul.f32 %v1658_v55, %v1355_v44  ;;  %v598_v59 = vmul.f32 %v1362_v48, %v1658_v55  ;;  %v1768_v62 = vmul.f32 %v1696_v30, %v1345_v34 }
  0xd9   :  { %v788_v1 = vadd.f32 %v756_v12, %v516_v17  ;;  %v1772_v23 = vmul.f32 %v1696_v30, %v1348_v38  ;;  %v1776_v20 = vmul.f32 %v1351_v42, %v1696_v30  ;;  %v1780_v29 = vmul.f32 %v1353_v43, %v1696_v30 }
  0xda   :  { %v1736_v39 = vpop.permute.xlu0 %269  ;;  %v402_v21 = vpop.permute.xlu1 %401  ;;  %842 = vadd.xlane.f32.xlu1 %v787_v58  ;;  %v342_v15 = vadd.f32 %v310_v9, %v1682_v46  ;;  %v311_v58 = vmul.f32 %v1692_v13, %v1360_v47  ;;  %v615_v28 = vmul.f32 %v1364_v50, %v1692_v13  ;;  %v772_v10 = vadd.f32 %v740_v18, %v500_v19 }
  0xdb   :  { %v437_v61 = vmul.f32 %v402_v21, %v1366_v52  ;;  %v677_v51 = vmul.f32 %v1376_v56, %v402_v21  ;;  %844 = vadd.xlane.f32.xlu0 %v788_v1  ;;  %v453_v7 = vmul.f32 %v402_v21, %v2080_v14  ;;  %v693_v60 = vmul.f32 %v1378_v57, %v402_v21 }
  0xdc   :  { %840 = vadd.xlane.f32.xlu2 %v786_v8  ;;  %v646_v1 = vadd.f32 %v614_v5, %v1690_v53  ;;  %v295_v46 = vmul.f32 %v1692_v13, %v1355_v44  ;;  %v599_v25 = vmul.f32 %v1362_v48, %v1692_v13  ;;  %v630_v53 = vadd.f32 %v598_v59, %v1686_v63 }
  0xdd   :  { %v469_v24 = vadd.f32 %v437_v61, %v325_v31  ;;  %v709_v2 = vadd.f32 %v677_v51, %v629_v32  ;;  %v485_v17 = vadd.f32 %v453_v7, %v341_v37  ;;  %v725_v12 = vadd.f32 %v693_v60, %v645_v33  ;;  %v170_v5 = vpop.permute.xlu2 %169 }
  0xde   :  { %v326_v61 = vadd.f32 %v294_v3, %v1678_v41  ;;  %v186_v51 = vmul.f32 %v165_v54, %v1345_v34  ;;  %v1802_v31 = vmul.f32 %v165_v54, %v1348_v38  ;;  %v1806_v13 = vmul.f32 %v1353_v43, %v165_v54 }
  0xdf   :  { %v501_v45 = vmax.f32 %v469_v24, 0.0  ;;  %v741_v49 = vmax.f32 %v709_v2, 0.0  ;;  %v517_v32 = vmax.f32 %v485_v17, 0.0  ;;  %v757_v9 = vmax.f32 %v725_v12, 0.0 }
  0xe0   :  { %v554_v2 = vmul.f32 %v1351_v42, %v165_v54  ;;  %v343_v41 = vadd.f32 %v311_v58, %v1710_v22  ;;  %v647_v63 = vadd.f32 %v615_v28, %v1728_v40  ;;  %v296_v59 = vmul.f32 %v1736_v39, %v1355_v44 }
  0xe1   :  { %v773_v55 = vadd.f32 %v741_v49, %v501_v45  ;;  %v312_v45 = vmul.f32 %v1736_v39, %v1360_v47  ;;  %v631_v54 = vadd.f32 %v599_v25, %v1714_v6  ;;  %v600_v22 = vmul.f32 %v1362_v48, %v1736_v39 }
  0xe2   :  { %v1782_v11 = vpop.permute.xlu0 %273  ;;  %v406_v0 = vpop.permute.xlu1 %405  ;;  %v616_v40 = vmul.f32 %v1364_v50, %v1736_v39  ;;  %v1821_v17 = vmul.f32 %v170_v5, %v1345_v34  ;;  %v1828_v6 = vmul.f32 %v170_v5, %v1348_v38 }
  0xe3   :  { %v438_v30 = vmul.f32 %v406_v0, %v1366_v52  ;;  %v454_v21 = vmul.f32 %v406_v0, %v2080_v14  ;;  %v678_v8 = vmul.f32 %v1376_v56, %v406_v0  ;;  %v694_v27 = vmul.f32 %v1378_v57, %v406_v0  ;;  %814 = vadd.xlane.f32.xlu1 %v773_v55 }
  0xe4   :  { %812 = vadd.xlane.f32.xlu2 %v772_v10  ;;  %v327_v55 = vadd.f32 %v295_v46, %v1706_v36  ;;  %v1835_v46 = vmul.f32 %v1353_v43, %v170_v5  ;;  %v297_v43 = vmul.f32 %v1782_v11, %v1355_v44 }
  0xe5   :  { %v486_v37 = vadd.f32 %v454_v21, %v342_v15  ;;  %v726_v7 = vadd.f32 %v694_v27, %v646_v1  ;;  %v470_v60 = vadd.f32 %v438_v30, %v326_v61  ;;  %v710_v24 = vadd.f32 %v678_v8, %v630_v53  ;;  %v422_v38 = vpop.permute.xlu2 %421 }
  0xe6   :  { %v789_v15 = vadd.f32 %v757_v9, %v517_v32  ;;  %v1832_v27 = vmul.f32 %v1351_v42, %v170_v5 }
  0xe7   :  { %v518_v19 = vmax.f32 %v486_v37, 0.0  ;;  %v758_v18 = vmax.f32 %v726_v7, 0.0  ;;  %v502_v33 = vmax.f32 %v470_v60, 0.0  ;;  %v742_v3 = vmax.f32 %v710_v24, 0.0 }
  0xe8   :  { %v344_v37 = vadd.f32 %v312_v45, %v1740_v26  ;;  %v648_v7 = vadd.f32 %v616_v40, %v1752_v35  ;;  %v328_v60 = vadd.f32 %v296_v59, %v1734_v4  ;;  %v313_v24 = vmul.f32 %v1782_v11, %v1360_v47 }
  0xe9   :  { %v790_v39 = vadd.f32 %v758_v18, %v518_v19  ;;  %v774_v1 = vadd.f32 %v742_v3, %v502_v33  ;;  %v617_v19 = vmul.f32 %v1364_v50, %v1782_v11  ;;  %v442_v26 = vmul.f32 %v422_v38, %v1366_v52 }
  0xea   :  { %v278_v49 = vpop.permute.xlu0 %277  ;;  %v410_v12 = vpop.permute.xlu1 %409  ;;  %v601_v45 = vmul.f32 %v1362_v48, %v1782_v11 }
  0xeb   :  { %v439_v58 = vmul.f32 %v410_v12, %v1366_v52  ;;  %v455_v28 = vmul.f32 %v410_v12, %v2080_v14  ;;  %v679_v0 = vmul.f32 %v1376_v56, %v410_v12  ;;  %v695_v36 = vmul.f32 %v1378_v57, %v410_v12  ;;  %848 = vadd.xlane.f32.xlu1 %v790_v39 }
  0xec   :  { %v298_v10 = vmul.f32 %v278_v49, %v1355_v44  ;;  %846 = vadd.xlane.f32.xlu2 %v789_v15  ;;  %v602_v25 = vmul.f32 %v1362_v48, %v278_v49  ;;  %816 = vadd.xlane.f32.xlu0 %v774_v1  ;;  %v618_v15 = vmul.f32 %v1364_v50, %v278_v49 }
  0xed   :  { %v487_v34 = vadd.f32 %v455_v28, %v343_v41  ;;  %v727_v30 = vadd.f32 %v695_v36, %v647_v63  ;;  %v471_v21 = vadd.f32 %v439_v58, %v327_v55  ;;  %v711_v8 = vadd.f32 %v679_v0, %v631_v54 }
  0xee   :  { %v330_v42 = vadd.f32 %v298_v10, %v186_v51  ;;  %v632_v63 = vadd.f32 %v600_v22, %v1748_v16  ;;  %v634_v33 = vadd.f32 %v602_v25, %v554_v2  ;;  %v682_v16 = vmul.f32 %v1376_v56, %v422_v38 }
  0xef   :  { %v519_v61 = vmax.f32 %v487_v34, 0.0  ;;  %v759_v53 = vmax.f32 %v727_v30, 0.0  ;;  %v503_v32 = vmax.f32 %v471_v21, 0.0  ;;  %v743_v9 = vmax.f32 %v711_v8, 0.0 }
  0xf0   :  { %v314_v55 = vmul.f32 %v278_v49, %v1360_v47  ;;  %v474_v54 = vadd.f32 %v442_v26, %v330_v42  ;;  %v345_v58 = vadd.f32 %v313_v24, %v1772_v23  ;;  %v649_v28 = vadd.f32 %v617_v19, %v1780_v29 }
  0xf1   :  { %v775_v41 = vadd.f32 %v743_v9, %v503_v32  ;;  %v791_v35 = vadd.f32 %v759_v53, %v519_v61  ;;  %v714_v0 = vadd.f32 %v682_v16, %v634_v33  ;;  %v458_v1 = vmul.f32 %v422_v38, %v2080_v14 }
  0xf2   :  { %v282_v5 = vpop.permute.xlu0 %281  ;;  %v414_v18 = vpop.permute.xlu1 %413  ;;  %v698_v34 = vmul.f32 %v1378_v57, %v422_v38  ;;  %v329_v30 = vadd.f32 %v297_v43, %v1768_v62  ;;  %v633_v21 = vadd.f32 %v601_v45, %v1776_v20  ;;  %v506_v25 = vmax.f32 %v474_v54, 0.0 }
  0xf3   :  { %v440_v4 = vmul.f32 %v414_v18, %v1366_v52  ;;  %v456_v51 = vmul.f32 %v414_v18, %v2080_v14  ;;  %v680_v3 = vmul.f32 %v1376_v56, %v414_v18  ;;  %v696_v59 = vmul.f32 %v1378_v57, %v414_v18 }
  0xf4   :  { %818 = vadd.xlane.f32.xlu2 %v775_v41  ;;  %850 = vadd.xlane.f32.xlu0 %v791_v35  ;;  %v346_v23 = vadd.f32 %v314_v55, %v1802_v31  ;;  %v299_v29 = vmul.f32 %v282_v5, %v1355_v44  ;;  %v603_v61 = vmul.f32 %v1362_v48, %v282_v5  ;;  %v746_v32 = vmax.f32 %v714_v0, 0.0 }
  0xf5   :  { %v488_v22 = vadd.f32 %v456_v51, %v344_v37  ;;  %v728_v40 = vadd.f32 %v696_v59, %v648_v7  ;;  %v472_v2 = vadd.f32 %v440_v4, %v328_v60  ;;  %v712_v12 = vadd.f32 %v680_v3, %v632_v63 }
  0xf6   :  { %v650_v9 = vadd.f32 %v618_v15, %v1806_v13  ;;  %v315_v31 = vmul.f32 %v282_v5, %v1360_v47  ;;  %v619_v44 = vmul.f32 %v1364_v50, %v282_v5  ;;  %v331_v19 = vadd.f32 %v299_v29, %v1821_v17 }
  0xf7   :  { %v520_v36 = vmax.f32 %v488_v22, 0.0  ;;  %v760_v11 = vmax.f32 %v728_v40, 0.0  ;;  %v504_v10 = vmax.f32 %v472_v2, 0.0  ;;  %v744_v39 = vmax.f32 %v712_v12, 0.0 }
  0xf8   :  { %v635_v26 = vadd.f32 %v603_v61, %v1832_v27  ;;  %v730_v35 = vadd.f32 %v698_v34, %v650_v9  ;;  %v651_v33 = vadd.f32 %v619_v44, %v1835_v46  ;;  %v778_v59 = vadd.f32 %v746_v32, %v506_v25  ;;  %v875_v25 = vld [vmem:[%s2062_s2 + $0x78] sm:$0xff]  ;;  %v873_v32 = vld [vmem:[%s2062_s2 + $0x68] sm:$0xff]  ;;  %v872_v9 = vld [vmem:[%s2062_s2 + $0x60] sm:$0xff] }
  0xf9   :  { %v792_v8 = vadd.f32 %v760_v11, %v520_v36  ;;  %v776_v49 = vadd.f32 %v744_v39, %v504_v10  ;;  %v912_v46 = vlaneseq  ;;  %1008 = vmatpush.msra.mxu0 %v875_v25  ;;  %v868_v44 = vld [vmem:[%s2062_s2 + $0x40] sm:$0xff] }
  0xfa   :  { %v418_v53 = vpop.permute.xlu1 %417  ;;  %v762_v27 = vmax.f32 %v730_v35, 0.0  ;;  %v1043_v35 = vld [vmem:[#allocation5 + $0x70] sm:$0xff] }
  0xfb   :  { %v441_v37 = vmul.f32 %v418_v53, %v1366_v52  ;;  %v457_v38 = vmul.f32 %v418_v53, %v2080_v14  ;;  %v681_v62 = vmul.f32 %v1376_v56, %v418_v53  ;;  %v697_v20 = vmul.f32 %v1378_v57, %v418_v53  ;;  %v426_v7 = vpop.permute.xlu0 %425  ;;  %820 = vadd.xlane.f32.xlu1 %v776_v49  ;;  %v874_v53 = vld [vmem:[%s2062_s2 + $0x70] sm:$0xff] }
  0xfc   :  { %v443_v48 = vmul.f32 %v426_v7, %v1366_v52  ;;  %v683_v60 = vmul.f32 %v1376_v56, %v426_v7  ;;  %852 = vadd.xlane.f32.xlu2 %v792_v8  ;;  %v459_v41 = vmul.f32 %v426_v7, %v2080_v14  ;;  %v699_v63 = vmul.f32 %v1378_v57, %v426_v7  ;;  %v870_v7 = vld [vmem:[%s2062_s2 + $0x50] sm:$0xff] }
  0xfd   :  { %v489_v13 = vadd.f32 %v457_v38, %v345_v58  ;;  %v729_v42 = vadd.f32 %v697_v20, %v649_v28  ;;  %v473_v43 = vadd.f32 %v441_v37, %v329_v30  ;;  %v713_v24 = vadd.f32 %v681_v62, %v633_v21  ;;  %1009 = vmatpush.msra.mxu0 %v874_v53  ;;  %v871_v38 = vld [vmem:[%s2062_s2 + $0x58] sm:$0xff] }
  0xfe   :  { %v490_v52 = vadd.f32 %v458_v1, %v346_v23  ;;  %v347_v56 = vadd.f32 %v315_v31, %v1828_v6  ;;  %v475_v3 = vadd.f32 %v443_v48, %v331_v19  ;;  %v715_v14 = vadd.f32 %v683_v60, %v635_v26  ;;  %v869_v31 = vld [vmem:[%s2062_s2 + $0x48] sm:$0xff]  ;;  %v867_v60 = vld [vmem:[%s2062_s2 + $0x38] sm:$0xff] }
  0xff   :  { %v521_v47 = vmax.f32 %v489_v13, 0.0  ;;  %v761_v18 = vmax.f32 %v729_v42, 0.0  ;;  %v505_v50 = vmax.f32 %v473_v43, 0.0  ;;  %v745_v5 = vmax.f32 %v713_v24, 0.0  ;;  %1010 = vmatpush.msra.mxu0 %v873_v32  ;;  %v866_v13 = vld [vmem:[%s2062_s2 + $0x30] sm:$0xff]  ;;  %v865_v24 = vld [vmem:[%s2062_s2 + $0x28] sm:$0xff] }
 0x100   :  { %v491_v57 = vadd.f32 %v459_v41, %v347_v56  ;;  %v731_v45 = vadd.f32 %v699_v63, %v651_v33  ;;  %v522_v17 = vmax.f32 %v490_v52, 0.0  ;;  %v507_v16 = vmax.f32 %v475_v3, 0.0  ;;  %v864_v41 = vld [vmem:[%s2062_s2 + $0x20] sm:$0xff]  ;;  %v863_v19 = vld [vmem:[%s2062_s2 + $0x18] sm:$0xff]  ;;  %v1037_v32 = vld [vmem:[#allocation5 + $0x40] sm:$0xff] }
 0x101   :  { %v793_v4 = vadd.f32 %v761_v18, %v521_v47  ;;  %v777_v51 = vadd.f32 %v745_v5, %v505_v50  ;;  %v747_v55 = vmax.f32 %v715_v14, 0.0  ;;  %v1882_v12 = vand.u32 127, %v912_v46  ;;  %1011 = vmatpush.msra.mxu0 %v872_v9  ;;  %v862_v47 = vld [vmem:[%s2062_s2 + $0x10] sm:$0xff]  ;;  %v861_v5 = vld [vmem:[%s2062_s2 + $0x8] sm:$0xff] }
 0x102   :  { %v523_v54 = vmax.f32 %v491_v57, 0.0  ;;  %v763_v22 = vmax.f32 %v731_v45, 0.0  ;;  %v794_v40 = vadd.f32 %v762_v27, %v522_v17  ;;  %v1044_v52 = vld [vmem:[#allocation5 + $0x78] sm:$0xff]  ;;  %v1042_v3 = vld [vmem:[#allocation5 + $0x68] sm:$0xff] }
 0x103   :  { %854 = vadd.xlane.f32.xlu1 %v793_v4  ;;  %822 = vadd.xlane.f32.xlu0 %v777_v51  ;;  %v779_v6 = vadd.f32 %v747_v55, %v507_v16  ;;  %v1885_v15 = vadd.s32 4294967288, %v1882_v12  ;;  %v919_v26 = vadd.s32 4294967280, %v1882_v12  ;;  %v923_v18 = vadd.s32 4294967272, %v1882_v12  ;;  %v860_v51 = vld [vmem:[%s2062_s2] sm:$0xff]  ;;  %v1041_v16 = vld [vmem:[#allocation5 + $0x60] sm:$0xff] }
 0x104   :  { %824 = vadd.xlane.f32.xlu2 %v778_v59  ;;  %v795_v2 = vadd.f32 %v763_v22, %v523_v54  ;;  %1012 = vmatpush.msra.mxu0 %v871_v38  ;;  %v927_v17 = vadd.s32 4294967264, %v1882_v12  ;;  %v931_v55 = vadd.s32 4294967256, %v1882_v12  ;;  %v943_v53 = vadd.s32 4294967232, %v1882_v12 }
 0x105   :  { %1049 = vmatpush.msra.mxu1 %v1044_v52  ;;  %v947_v9 = vadd.s32 4294967224, %v1882_v12 }
 0x106   :  { %1013 = vmatpush.msra.mxu0 %v870_v7 }
 0x107   :  { %1050 = vmatpush.msra.mxu1 %v1043_v35  ;;  %v1034_v35 = vld [vmem:[#allocation5 + $0x28] sm:$0xff] }
 0x108   :  { %1014 = vmatpush.msra.mxu0 %v869_v31  ;;  %v951_v31 = vadd.s32 4294967216, %v1882_v12 }
 0x109   :  { %1051 = vmatpush.msra.mxu1 %v1042_v3  ;;  %v967_v3 = vadd.s32 4294967184, %v1882_v12 }
 0x10a   :  { %1015 = vmatpush.msra.mxu0 %v868_v44  ;;  %v1036_v44 = vld [vmem:[#allocation5 + $0x38] sm:$0xff] }
 0x10b   :  { %856 = vadd.xlane.f32.xlu0 %v794_v40  ;;  %826 = vadd.xlane.f32.xlu1 %v779_v6  ;;  %v1040_v40 = vld [vmem:[#allocation5 + $0x58] sm:$0xff] }
 0x10c   :  { %858 = vadd.xlane.f32.xlu2 %v795_v2  ;;  %1016 = vmatpush.msra.mxu0 %v867_v60  ;;  %v955_v60 = vadd.s32 4294967208, %v1882_v12 }
 0x10d   :  { %1052 = vmatpush.msra.mxu1 %v1041_v16 }
 0x10e   :  { %1017 = vmatpush.msra.mxu0 %v866_v13 }
 0x10f   :  { %1053 = vmatpush.msra.mxu1 %v1040_v40 }
 0x110   :  { %1018 = vmatpush.msra.mxu0 %v865_v24  ;;  %v959_v24 = vadd.s32 4294967200, %v1882_v12 }
 0x112   :  { %1019 = vmatpush.msra.mxu0 %v864_v41  ;;  %v1035_v41 = vld [vmem:[#allocation5 + $0x30] sm:$0xff] }
 0x114   :  { %1020 = vmatpush.msra.mxu0 %v863_v19 }
 0x116   :  { %1021 = vmatpush.msra.mxu0 %v862_v47 }
 0x118   :  { %1022 = vmatpush.msra.mxu0 %v861_v5 }
 0x11a   :  { %1023 = vmatpush.msra.mxu0 %v860_v51 }
 0x125   :  { %v797_v58 = vpop.xlane.xlu1 %796 }
 0x126   :  { %v914_v28 = vperm.slane %v797_v58, %v1882_v12  ;;  %v1898_v34 = vpop.xlane.xlu0 %828 }
 0x127   :  { %v799_v0 = vpop.xlane.xlu2 %798  ;;  %v975_v45 = vperm.slane %v1898_v34, %v1882_v12 }
 0x128   :  { %v916_v36 = vperm.slane %v799_v0, %v1885_v15  ;;  %v1039_v0 = vld [vmem:[#allocation5 + $0x50] sm:$0xff] }
 0x129   :  { %1054 = vmatpush.msra.mxu1 %v1039_v0 }
 0x12a   :  { %v1890_v11 = vsel %vm917_vm6, %v916_v36, %v914_v28  ;;  %v935_v28 = vadd.s32 4294967248, %v1882_v12 }
 0x12d   :  { %v1892_v10 = vpop.xlane.xlu1 %800 }
 0x12e   :  { %v1906_v49 = vpop.xlane.xlu0 %804  ;;  %v920_v56 = vperm.slane %v1892_v10, %v919_v26 }
 0x12f   :  { %v1894_v39 = vpop.xlane.xlu2 %830 }
 0x130   :  { %v976_v33 = vperm.slane %v1894_v39, %v1885_v15  ;;  %v922_v54 = vsel %vm921_vm7, %v920_v56, %v1890_v11  ;;  %v928_v15 = vperm.slane %v1906_v49, %v927_v17 }
 0x132   :  { %v977_v22 = vsel %vm917_vm6, %v976_v33, %v975_v45 }
 0x135   :  { %v1896_v1 = vpop.xlane.xlu1 %802 }
 0x136   :  { %v1915_v61 = vpop.xlane.xlu0 %838  ;;  %v924_v14 = vperm.slane %v1896_v1, %v923_v18  ;;  %v1038_v1 = vld [vmem:[#allocation5 + $0x48] sm:$0xff] }
 0x137   :  { %v1900_v30 = vpop.xlane.xlu2 %832  ;;  %1055 = vmatpush.msra.mxu1 %v1038_v1 }
 0x138   :  { %v978_v59 = vperm.slane %v1900_v30, %v919_v26  ;;  %v926_v6 = vsel %vm925_vm8, %v924_v14, %v922_v54  ;;  %v963_v26 = vadd.s32 4294967192, %v1882_v12  ;;  %v1033_v14 = vld [vmem:[#allocation5 + $0x20] sm:$0xff]  ;;  %v971_v54 = vadd.s32 4294967176, %v1882_v12 }
 0x139   :  { %v930_v11 = vsel %vm929_vm9, %v928_v15, %v926_v6  ;;  %1056 = vmatpush.msra.mxu1 %v1037_v32 }
 0x13a   :  { %v979_v2 = vsel %vm921_vm7, %v978_v59, %v977_v22 }
 0x13b   :  { %1057 = vmatpush.msra.mxu1 %v1036_v44 }
 0x13d   :  { %v1902_v21 = vpop.xlane.xlu1 %836  ;;  %1058 = vmatpush.msra.mxu1 %v1035_v41 }
 0x13e   :  { %v982_v36 = vperm.slane %v1902_v21, %v927_v17  ;;  %v984_v21 = vperm.slane %v1915_v61, %v931_v55 }
 0x13f   :  { %v1904_v8 = vpop.xlane.xlu2 %834  ;;  %1059 = vmatpush.msra.mxu1 %v1034_v35 }
 0x140   :  { %v980_v27 = vperm.slane %v1904_v8, %v923_v18  ;;  %v939_v8 = vadd.s32 4294967240, %v1882_v12 }
 0x141   :  { %1060 = vmatpush.msra.mxu1 %v1033_v14 }
 0x142   :  { %v981_v58 = vsel %vm925_vm8, %v980_v27, %v979_v2  ;;  %v1032_v27 = vld [vmem:[#allocation5 + $0x18] sm:$0xff] }
 0x143   :  { %v983_v34 = vsel %vm929_vm9, %v982_v36, %v981_v58  ;;  %1061 = vmatpush.msra.mxu1 %v1032_v27 }
 0x144   :  { %v985_v7 = vsel %vm933_vm10, %v984_v21, %v983_v34  ;;  %v1029_v21 = vld [vmem:[#allocation5] sm:$0xff] }
 0x145   :  { %v1913_v29 = vpop.xlane.xlu1 %808 }
 0x146   :  { %v1931_v62 = vpop.xlane.xlu0 %810 }
 0x147   :  { %v1911_v23 = vpop.xlane.xlu2 %806  ;;  %v940_v61 = vperm.slane %v1931_v62, %v939_v8 }
 0x148   :  { %v932_v46 = vperm.slane %v1911_v23, %v931_v55  ;;  %v936_v23 = vperm.slane %v1913_v29, %v935_v28 }
 0x14a   :  { %v934_v30 = vsel %vm933_vm10, %v932_v46, %v930_v11 }
 0x14b   :  { %v938_v38 = vsel %vm937_vm11, %v936_v23, %v934_v30  ;;  %v1107_v23 = vld [vmem:[%s2063_s3] ss:$0 sm:$0xff] }
 0x14c   :  { %v942_v19 = vsel %vm941_vm12, %v940_v61, %v938_v38  ;;  %v1108_v38 = vld [vmem:[%s2065_s5] ss:$0 sm:$0xff] }
 0x14d   :  { %v1933_v20 = vpop.xlane.xlu1 %842 }
 0x14e   :  { %v1952_v42 = vpop.xlane.xlu0 %844  ;;  %v988_v13 = vperm.slane %v1933_v20, %v939_v8 }
 0x14f   :  { %v1926_v37 = vpop.xlane.xlu2 %840  ;;  %v990_v56 = vperm.slane %v1952_v42, %v943_v53 }
 0x150   :  { %v986_v49 = vperm.slane %v1926_v37, %v935_v28 }
 0x152   :  { %v987_v29 = vsel %vm937_vm11, %v986_v49, %v985_v7  ;;  %v1031_v49 = vld [vmem:[#allocation5 + $0x10] sm:$0xff] }
 0x153   :  { %v989_v62 = vsel %vm941_vm12, %v988_v13, %v987_v29  ;;  %1062 = vmatpush.msra.mxu1 %v1031_v49 }
 0x156   :  { %v1954_v43 = vpop.xlane.xlu1 %814 }
 0x157   :  { %v1944_v48 = vpop.xlane.xlu2 %812 }
 0x158   :  { %v944_v37 = vperm.slane %v1944_v48, %v943_v53  ;;  %v948_v48 = vperm.slane %v1954_v43, %v947_v9 }
 0x15a   :  { %v946_v47 = vsel %vm945_vm13, %v944_v37, %v942_v19 }
 0x15e   :  { %v1980_v4 = vpop.xlane.xlu1 %848 }
 0x15f   :  { %v1962_v63 = vpop.xlane.xlu2 %846  ;;  %v1972_v50 = vpop.xlane.xlu0 %816  ;;  %v994_v59 = vperm.slane %v1980_v4, %v951_v31 }
 0x160   :  { %v992_v18 = vperm.slane %v1962_v63, %v947_v9  ;;  %v952_v20 = vperm.slane %v1972_v50, %v951_v31  ;;  %v991_v63 = vsel %vm945_vm13, %v990_v56, %v989_v62  ;;  %v950_v50 = vsel %vm949_vm14, %v948_v48, %v946_v47 }
 0x162   :  { %v993_v42 = vsel %vm949_vm14, %v992_v18, %v991_v63 }
 0x163   :  { %v995_v6 = vsel %vm953_vm15, %v994_v59, %v993_v42 }
 0x167   :  { %v1987_v57 = vpop.xlane.xlu2 %818  ;;  %v2002_v10 = vpop.xlane.xlu0 %850 }
 0x168   :  { %v956_v33 = vperm.slane %v1987_v57, %v955_v60  ;;  %v954_v57 = vsel %vm953_vm15, %v952_v20, %v950_v50  ;;  %v996_v17 = vperm.slane %v2002_v10, %v955_v60 }
 0x16a   :  { %v958_v16 = vsel %vm957_vm1, %v956_v33, %v954_v57  ;;  %v997_v46 = vsel %vm957_vm1, %v996_v17, %v995_v6 }
 0x16e   :  { %v2004_v39 = vpop.xlane.xlu1 %820 }
 0x16f   :  { %v2009_v25 = vpop.xlane.xlu2 %852  ;;  %v960_v51 = vperm.slane %v2004_v39, %v959_v24 }
 0x170   :  { %v998_v55 = vperm.slane %v2009_v25, %v959_v24  ;;  %v1030_v25 = vld [vmem:[#allocation5 + $0x8] sm:$0xff] }
 0x171   :  { %v962_v22 = vsel %vm961_vm2, %v960_v51, %v958_v16  ;;  %1063 = vmatpush.msra.mxu1 %v1030_v25 }
 0x172   :  { %v999_v28 = vsel %vm961_vm2, %v998_v55, %v997_v46 }
 0x173   :  { %1064 = vmatpush.msra.mxu1 %v1029_v21 }
 0x176   :  { %v855_v5 = vpop.xlane.xlu1 %854  ;;  %v823_v52 = vpop.xlane.xlu0 %822 }
 0x177   :  { %v825_v43 = vpop.xlane.xlu2 %824  ;;  %v964_v45 = vperm.slane %v823_v52, %v963_v26  ;;  %v1000_v4 = vperm.slane %v855_v5, %v963_v26 }
 0x178   :  { %v968_v40 = vperm.slane %v825_v43, %v967_v3 }
 0x179   :  { %v966_v2 = vsel %vm965_vm3, %v964_v45, %v962_v22  ;;  %v1001_v11 = vsel %vm965_vm3, %v1000_v4, %v999_v28 }
 0x17a   :  { %v970_v39 = vsel %vm969_vm4, %v968_v40, %v966_v2 }
 0x17e   :  { %v827_v15 = vpop.xlane.xlu1 %826  ;;  %v857_v58 = vpop.xlane.xlu0 %856 }
 0x17f   :  { %v859_v0 = vpop.xlane.xlu2 %858  ;;  %v972_v12 = vperm.slane %v827_v15, %v971_v54  ;;  %v1002_v36 = vperm.slane %v857_v58, %v967_v3 }
 0x180   :  { %v1004_v10 = vperm.slane %v859_v0, %v971_v54 }
 0x181   :  { %v974_v1 = vsel %vm973_vm5, %v972_v12, %v970_v39  ;;  %v1003_v34 = vsel %vm969_vm4, %v1002_v36, %v1001_v11 }
 0x182   :  { %v1005_v30 = vsel %vm973_vm5, %v1004_v10, %v1003_v34 }
 0x183   :  { %v1006_v8 = vsel %vm81_vm0, %v1005_v30, %v974_v1 }
 0x184   :  { %1024 = vmatmul.f32.vlgmr.msra.gmra.mxu0 %v1006_v8 }
 0x201   :  { %v1025_v53 = vpop.f32.mrf.mxu0 }
 0x202   :  { %v1026_v32 = vadd.f32 %v1107_v23, %v1025_v53 }
 0x204   :  { %v1028_v9 = vmax.f32 %v1026_v32, 0.0 }
 0x206   :  { %1065 = vmatmul.f32.vlgmr.msra.gmra.mxu1 %v1028_v9 }
 0x283   :  { %v1066_v7 = vpop.f32.mrf.mxu1 }
 0x284   :  { %v1067_v37 = vadd.f32 %v1108_v38, %v1066_v7 }
 0x286   :  { %1069 = vst [vmem:[#allocation7] sm:$0x3] %v1067_v37 }
 0x287   :  { %1080 = dma.vmem_to_hbm [thread:$0]  %s1076_s21, 32, %s1078_s24, [#allocation4]  }
 0x288   :  { %1185 = dma.done.wait [#allocation4], 32  }
 0x289   :  { %1186 = vsyncadd [#allocation4], 4294967264 }
 0x28a   :  { %1085 = vsyncpa [#allocation3], 1 }
 0x28b   :  { %1086 = vsyncpa [#allocation6], 1 }
 0x28c   :  { %1087 = vsyncpa [#allocation4], 1 }

</bundles_post_ra>
